<compile_context>
chip_gen: v7x
topology: tpu7x:2x2x1
jax: 0.10.0
libtpu: 0.0.40
codegen_flags: <defaults>
</compile_context>

<pallas_src>
import jax
import jax.numpy as jnp
import numpy as np
from jax.experimental import pallas as pl
from jax.experimental.pallas import tpu as pltpu


def _cra_kernel(x_ref, wqt_ref, bq_ref, wk_ref, bk_ref, wv_ref, bv_ref, out_ref):
    # x_ref block: (bt, C, HW), channels-first (PyTorch-native memory layout).
    bt = x_ref.shape[0]
    inv_hw = 1.0 / x_ref.shape[2]

    for i in range(bt):                       # static unroll over the batch tile
        x = x_ref[i]                          # (C, HW)  -- lane axis = HW (lane-dense)

        # Channel descriptor: mean over spatial positions (lane reduction).
        avg = jnp.sum(x, axis=1, keepdims=True) * inv_hw                     # (C, 1)

        # Key projection (tiny): k = Wk @ avg + bk.
        k = jnp.dot(wk_ref[...], avg,
                    preferred_element_type=jnp.float32) + bk_ref[...]        # (Cr, 1)

        # Fold k into the query projection (q is never materialized):
        #   scores[s] = sum_c x[c, s] * w_eff[c] + b_eff
        w_eff = jnp.dot(wqt_ref[...], k,
                        preferred_element_type=jnp.float32)                  # (C, 1)
        b_eff = jnp.sum(bq_ref[...] * k, keepdims=True)                      # (1, 1)

        # Attention scores, lane-dense over HW (VPU broadcast-mul + sublane reduce).
        scores = jnp.sum(x * w_eff, axis=0, keepdims=True) + b_eff           # (1, HW)

        # Softmax over the spatial (lane) axis.
        m = jnp.max(scores, axis=1, keepdims=True)
        e = jnp.exp(scores - m)
        attn = e * pl.reciprocal(jnp.sum(e, axis=1, keepdims=True),
                                 approx=False)                               # (1, HW)

        # Value projection: v = Wv @ avg + bv.
        v = jnp.dot(wv_ref[...], avg,
                    preferred_element_type=jnp.float32) + bv_ref[...]        # (C, 1)

        # Outer product in channels-first layout (pure VPU broadcast), then one
        # small in-VMEM transpose to match PyTorch's (HW, C)-contiguous bytes.
        out_cf = v * attn                                                    # (C, HW)
        out_ref[i] = out_cf.T.astype(out_ref.dtype)                          # (HW, C)


def cra_forward(x, params, *, batch_tile=1):
    """x: (B, C, H, W) float32. params: PyTorch-convention Linear weights.

    batch_tile: batch elements processed per grid step.
      - keep >=2 grid steps on v7x (2 TensorCores share parallel grid axes);
      - raise it on v5e/v6e to amortize per-step pipeline overhead.
    """
    B, C, H, W = x.shape
    HW = H * W
    Cr = params["wq"].shape[0]
    assert B % batch_tile == 0
    bt = batch_tile

    # Free reinterpretation: (B, C, H, W) -> (B, C, HW).  NO transpose in the wrapper.
    x_flat = x.reshape(B, C, HW)

    # Weights: wq pre-transposed (for the fold), wk / wv in PyTorch (out, in) form.
    wq_t = params["wq"].T                   # (C, Cr)
    wk = params["wk"]                       # (Cr, C)
    wv = params["wv"]                       # (C, C)
    bq = params["bq"].reshape(Cr, 1)
    bk = params["bk"].reshape(Cr, 1)
    bv = params["bv"].reshape(C, 1)

    full = lambda shape: pl.BlockSpec(shape, lambda b: tuple(0 for _ in shape))

    out_bhwc = pl.pallas_call(
        _cra_kernel,
        out_shape=jax.ShapeDtypeStruct((B, HW, C), x.dtype),
        grid_spec=pltpu.PrefetchScalarGridSpec(
            num_scalar_prefetch=0,
            grid=(B // bt,),
            in_specs=[
                pl.BlockSpec((bt, C, HW), lambda b: (b, 0, 0)),   # x (channels-first)
                full((C, Cr)),                                    # wq^T
                full((Cr, 1)),                                    # bq
                full((Cr, C)),                                    # wk
                full((Cr, 1)),                                    # bk
                full((C, C)),                                     # wv
                full((C, 1)),                                     # bv
            ],
            out_specs=pl.BlockSpec((bt, HW, C), lambda b: (b, 0, 0)),
        ),
        compiler_params=pltpu.CompilerParams(
            dimension_semantics=("parallel",)),
    )(x_flat, wq_t, bq, wk, bk, wv, bv)

    # PyTorch: out.view(B, C, H, W) on a contiguous (B, HW, C) tensor
    # -> plain memory reinterpretation == reshape (NOT a transpose).
    return out_bhwc.reshape(B, C, H, W)


def cra_reference(x, params):
    """Pure-JAX reference mirroring the PyTorch forward exactly."""
    B, C, H, W = x.shape
    flat = x.reshape(B, C, H * W)                              # (B, C, HW)
    avg = jnp.mean(flat, axis=-1, keepdims=True)               # (B, C, 1)
    q = jnp.einsum("bsc,rc->bsr", jnp.transpose(flat, (0, 2, 1)),
                   params["wq"]) + params["bq"]                 # (B, HW, Cr)
    k = jnp.einsum("bsc,rc->bsr", jnp.transpose(avg, (0, 2, 1)),
                   params["wk"]) + params["bk"]                 # (B, 1, Cr)
    v = jnp.einsum("bsc,rc->bsr", jnp.transpose(avg, (0, 2, 1)),
                   params["wv"]) + params["bv"]                 # (B, 1, C)
    scores = jnp.einsum("bsr,btr->bst", q, k)                   # (B, HW, 1)
    attn = jax.nn.softmax(scores, axis=1)
    out = jnp.einsum("bst,btc->bsc", attn, v)                   # (B, HW, C)
    return out.reshape(B, C, H, W)


if __name__ == "__main__":
    B, C, H, W = 2, 32, 16, 16
    reduction_ratio = 16
    Cr = C // reduction_ratio  # 2

    key = jax.random.PRNGKey(0)
    kx, k1, k2, k3, k4, k5, k6 = jax.random.split(key, 7)

    x = jax.random.normal(kx, (B, C, H, W), dtype=jnp.float32)

    # Deterministic parameter init (PyTorch Linear convention: W (out, in), b (out,))
    bound = 1.0 / np.sqrt(C)
    params = {
        "wq": jax.random.uniform(k1, (Cr, C), jnp.float32, -bound, bound),
        "bq": jax.random.uniform(k2, (Cr,), jnp.float32, -bound, bound),
        "wk": jax.random.uniform(k3, (Cr, C), jnp.float32, -bound, bound),
        "bk": jax.random.uniform(k4, (Cr,), jnp.float32, -bound, bound),
        "wv": jax.random.uniform(k5, (C, C), jnp.float32, -bound, bound),
        "bv": jax.random.uniform(k6, (C,), jnp.float32, -bound, bound),
    }

    out = jax.block_until_ready(cra_forward(x, params, batch_tile=1))
    ref = jax.block_until_ready(cra_reference(x, params))

    assert out.shape == (B, C, H, W), out.shape
    np.testing.assert_allclose(np.asarray(out), np.asarray(ref), rtol=1e-5, atol=1e-5)
    print("KERNEL_OK")
</pallas_src>

<mosaic_0001>
module attributes {stable_mosaic.version = 11 : i64} {
  func.func @_cra_kernel(%arg0: i32, %arg1: memref<1x32x256xf32, #tpu.memory_space<vmem>>, %arg2: memref<32x2xf32, #tpu.memory_space<vmem>>, %arg3: memref<2x1xf32, #tpu.memory_space<vmem>>, %arg4: memref<2x32xf32, #tpu.memory_space<vmem>>, %arg5: memref<2x1xf32, #tpu.memory_space<vmem>>, %arg6: memref<32x32xf32, #tpu.memory_space<vmem>>, %arg7: memref<32x1xf32, #tpu.memory_space<vmem>>, %arg8: memref<1x256x32xf32, #tpu.memory_space<vmem>>) attributes {dimension_semantics = [#tpu.dimension_semantics<parallel>], iteration_bounds = array<i64: 2>, scalar_prefetch = 0 : i64, scratch_operands = 0 : i64, tpu.core_type = #tpu.core_type<tc>, window_params = [{transform_indices = @transform_0, window_bounds = array<i64: 1, 32, 256>}, {pipeline_mode = #tpu.pipeline_mode<synchronous>, transform_indices = @transform_1, window_bounds = array<i64: 32, 2>}, {pipeline_mode = #tpu.pipeline_mode<synchronous>, transform_indices = @transform_2, window_bounds = array<i64: 2, 1>}, {pipeline_mode = #tpu.pipeline_mode<synchronous>, transform_indices = @transform_3, window_bounds = array<i64: 2, 32>}, {pipeline_mode = #tpu.pipeline_mode<synchronous>, transform_indices = @transform_4, window_bounds = array<i64: 2, 1>}, {pipeline_mode = #tpu.pipeline_mode<synchronous>, transform_indices = @transform_5, window_bounds = array<i64: 32, 32>}, {pipeline_mode = #tpu.pipeline_mode<synchronous>, transform_indices = @transform_6, window_bounds = array<i64: 32, 1>}, {transform_indices = @transform_7, window_bounds = array<i64: 1, 256, 32>}]} {
    %c0 = arith.constant 0 : index
    %c0_0 = arith.constant 0 : index
    %c0_1 = arith.constant 0 : index
    %0 = vector.load %arg1[%c0, %c0_0, %c0_1] : memref<1x32x256xf32, #tpu.memory_space<vmem>>, vector<1x32x256xf32>
    %1 = vector.shape_cast %0 : vector<1x32x256xf32> to vector<32x256xf32>
    %cst = arith.constant dense<0.000000e+00> : vector<32xf32>
    %2 = vector.multi_reduction <add>, %1, %cst [1] : vector<32x256xf32> to vector<32xf32>
    %3 = vector.shape_cast %2 : vector<32xf32> to vector<32x1xf32>
    %cst_2 = arith.constant 3.906250e-03 : f32
    %4 = vector.broadcast %cst_2 : f32 to vector<32x1xf32>
    %5 = arith.mulf %3, %4 : vector<32x1xf32>
    %c0_3 = arith.constant 0 : index
    %c0_4 = arith.constant 0 : index
    %6 = vector.load %arg4[%c0_3, %c0_4] : memref<2x32xf32, #tpu.memory_space<vmem>>, vector<2x32xf32>
    %cst_5 = arith.constant dense<0.000000e+00> : vector<2x1xf32>
    %7 = tpu.matmul %6, %5, %cst_5 {dimension_numbers = #tpu.dot_dimension_numbers<[1], [0], [0], [1], [0, 0, 1, 1], [], []>} : vector<2x32xf32>, vector<32x1xf32>, vector<2x1xf32> -> vector<2x1xf32>
    %c0_6 = arith.constant 0 : index
    %c0_7 = arith.constant 0 : index
    %8 = vector.load %arg5[%c0_6, %c0_7] : memref<2x1xf32, #tpu.memory_space<vmem>>, vector<2x1xf32>
    %9 = arith.addf %7, %8 : vector<2x1xf32>
    %c0_8 = arith.constant 0 : index
    %c0_9 = arith.constant 0 : index
    %10 = vector.load %arg2[%c0_8, %c0_9] : memref<32x2xf32, #tpu.memory_space<vmem>>, vector<32x2xf32>
    %cst_10 = arith.constant dense<0.000000e+00> : vector<32x1xf32>
    %11 = tpu.matmul %10, %9, %cst_10 {dimension_numbers = #tpu.dot_dimension_numbers<[1], [0], [0], [1], [0, 0, 1, 1], [], []>} : vector<32x2xf32>, vector<2x1xf32>, vector<32x1xf32> -> vector<32x1xf32>
    %c0_11 = arith.constant 0 : index
    %c0_12 = arith.constant 0 : index
    %12 = vector.load %arg3[%c0_11, %c0_12] : memref<2x1xf32, #tpu.memory_space<vmem>>, vector<2x1xf32>
    %13 = arith.mulf %12, %9 : vector<2x1xf32>
    %14 = vector.shape_cast %13 : vector<2x1xf32> to vector<1x2x1xf32>
    %cst_13 = arith.constant dense<0.000000e+00> : vector<1xf32>
    %15 = vector.multi_reduction <add>, %14, %cst_13 [1, 2] : vector<1x2x1xf32> to vector<1xf32>
    %16 = vector.shape_cast %15 : vector<1xf32> to vector<1x1x1xf32>
    %17 = vector.extract %16[0, 0, 0] : f32 from vector<1x1x1xf32>
    %18 = vector.broadcast %17 : f32 to vector<1x1xf32>
    %19 = vector.broadcast %11 : vector<32x1xf32> to vector<32x256xf32>
    %20 = arith.mulf %1, %19 : vector<32x256xf32>
    %cst_14 = arith.constant dense<0.000000e+00> : vector<256xf32>
    %21 = vector.multi_reduction <add>, %20, %cst_14 [0] : vector<32x256xf32> to vector<256xf32>
    %22 = vector.shape_cast %21 : vector<256xf32> to vector<1x256xf32>
    %23 = vector.broadcast %18 : vector<1x1xf32> to vector<1x256xf32>
    %24 = arith.addf %22, %23 : vector<1x256xf32>
    %cst_15 = arith.constant dense<0xFF800000> : vector<1xf32>
    %25 = vector.multi_reduction <maximumf>, %24, %cst_15 [1] : vector<1x256xf32> to vector<1xf32>
    %26 = vector.shape_cast %25 : vector<1xf32> to vector<1x1xf32>
    %27 = vector.broadcast %26 : vector<1x1xf32> to vector<1x256xf32>
    %28 = arith.subf %24, %27 : vector<1x256xf32>
    %29 = math.exp %28 : vector<1x256xf32>
    %cst_16 = arith.constant dense<0.000000e+00> : vector<1xf32>
    %30 = vector.multi_reduction <add>, %29, %cst_16 [1] : vector<1x256xf32> to vector<1xf32>
    %31 = vector.shape_cast %30 : vector<1xf32> to vector<1x1xf32>
    %32 = tpu.reciprocal %31 : vector<1x1xf32> -> vector<1x1xf32>
    %33 = vector.broadcast %32 : vector<1x1xf32> to vector<1x256xf32>
    %34 = arith.mulf %29, %33 : vector<1x256xf32>
    %c0_17 = arith.constant 0 : index
    %c0_18 = arith.constant 0 : index
    %35 = vector.load %arg6[%c0_17, %c0_18] : memref<32x32xf32, #tpu.memory_space<vmem>>, vector<32x32xf32>
    %cst_19 = arith.constant dense<0.000000e+00> : vector<32x1xf32>
    %36 = tpu.matmul %35, %5, %cst_19 {dimension_numbers = #tpu.dot_dimension_numbers<[1], [0], [0], [1], [0, 0, 1, 1], [], []>} : vector<32x32xf32>, vector<32x1xf32>, vector<32x1xf32> -> vector<32x1xf32>
    %c0_20 = arith.constant 0 : index
    %c0_21 = arith.constant 0 : index
    %37 = vector.load %arg7[%c0_20, %c0_21] : memref<32x1xf32, #tpu.memory_space<vmem>>, vector<32x1xf32>
    %38 = arith.addf %36, %37 : vector<32x1xf32>
    %39 = vector.broadcast %38 : vector<32x1xf32> to vector<32x256xf32>
    %40 = vector.broadcast %34 : vector<1x256xf32> to vector<32x256xf32>
    %41 = arith.mulf %39, %40 : vector<32x256xf32>
    %42 = tpu.transpose %41, [1, 0] : vector<32x256xf32> -> vector<256x32xf32>
    %c0_22 = arith.constant 0 : index
    %c0_23 = arith.constant 0 : index
    %c0_24 = arith.constant 0 : index
    %43 = vector.load %arg8[%c0_22, %c0_23, %c0_24] : memref<1x256x32xf32, #tpu.memory_space<vmem>>, vector<1x256x32xf32>
    %44 = vector.shape_cast %43 : vector<1x256x32xf32> to vector<256x32xf32>
    %45 = vector.shape_cast %42 : vector<256x32xf32> to vector<1x256x32xf32>
    tpu.vector_store %arg8[%c0_22, %c0_23, %c0_24], %45 {strides = array<i32>} : memref<1x256x32xf32, #tpu.memory_space<vmem>>, vector<1x256x32xf32>,
    return
  }
  func.func @transform_0(%arg0: i32) -> (i32, i32, i32) {
    %c0_i32 = arith.constant 0 : i32
    %c0_i32_0 = arith.constant 0 : i32
    %c0_i32_1 = arith.constant 0 : i32
    return %arg0, %c0_i32, %c0_i32_0 : i32, i32, i32
  }
  func.func @transform_1(%arg0: i32) -> (i32, i32) {
    %c0_i32 = arith.constant 0 : i32
    %c0_i32_0 = arith.constant 0 : i32
    %c0_i32_1 = arith.constant 0 : i32
    return %c0_i32, %c0_i32_0 : i32, i32
  }
  func.func @transform_2(%arg0: i32) -> (i32, i32) {
    %c0_i32 = arith.constant 0 : i32
    %c0_i32_0 = arith.constant 0 : i32
    %c0_i32_1 = arith.constant 0 : i32
    return %c0_i32, %c0_i32_0 : i32, i32
  }
  func.func @transform_3(%arg0: i32) -> (i32, i32) {
    %c0_i32 = arith.constant 0 : i32
    %c0_i32_0 = arith.constant 0 : i32
    %c0_i32_1 = arith.constant 0 : i32
    return %c0_i32, %c0_i32_0 : i32, i32
  }
  func.func @transform_4(%arg0: i32) -> (i32, i32) {
    %c0_i32 = arith.constant 0 : i32
    %c0_i32_0 = arith.constant 0 : i32
    %c0_i32_1 = arith.constant 0 : i32
    return %c0_i32, %c0_i32_0 : i32, i32
  }
  func.func @transform_5(%arg0: i32) -> (i32, i32) {
    %c0_i32 = arith.constant 0 : i32
    %c0_i32_0 = arith.constant 0 : i32
    %c0_i32_1 = arith.constant 0 : i32
    return %c0_i32, %c0_i32_0 : i32, i32
  }
  func.func @transform_6(%arg0: i32) -> (i32, i32) {
    %c0_i32 = arith.constant 0 : i32
    %c0_i32_0 = arith.constant 0 : i32
    %c0_i32_1 = arith.constant 0 : i32
    return %c0_i32, %c0_i32_0 : i32, i32
  }
  func.func @transform_7(%arg0: i32) -> (i32, i32, i32) {
    %c0_i32 = arith.constant 0 : i32
    %c0_i32_0 = arith.constant 0 : i32
    %c0_i32_1 = arith.constant 0 : i32
    return %arg0, %c0_i32, %c0_i32_0 : i32, i32, i32
  }
}

</mosaic_0001>

<bundles_post_ra>
// kernel: tpu_custom_call.1
= control target key start
LH: loop header
LB: loop body
LE: loop exit
PB: predicated region body
PF: predicated region fallthrough
CT: control target
= control target key end

     0   :  { %12 = vsyncpa [#allocation3], 0  ;;  %s1395_s0 = inlined_call_operand.hbm [shape: f32[2,32,256], index: 0, kind: input, shape index: {}]   ;;  %s1396_s1 = inlined_call_operand.vmem [shape: f32[32,2], index: 1, kind: input, shape index: {}]   ;;  %s1397_s2 = inlined_call_operand.vmem [shape: f32[2,1], index: 2, kind: input, shape index: {}]   ;;  %s1398_s3 = inlined_call_operand.vmem [shape: f32[2,32], index: 3, kind: input, shape index: {}]   ;;  %s1399_s4 = inlined_call_operand.vmem [shape: f32[2,1], index: 4, kind: input, shape index: {}]   ;;  %s1400_s5 = inlined_call_operand.vmem [shape: f32[32,32], index: 5, kind: input, shape index: {}]   ;;  %s1401_s6 = inlined_call_operand.vmem [shape: f32[32,1], index: 6, kind: input, shape index: {}]   ;;  %s1402_s7 = inlined_call_operand.vmem [shape: f32[2,256,32], index: 7, kind: output, shape index: {}]  }
   0x1   :  { %14 = vsyncpa [#allocation3 + $0x1], 0  ;;  %s1135_s24 = smov 0   ;;  %s1137_s25 = smov 0  }
   0x2   :  { %s1139_s26 = smov 0   ;;  %s1141_s27 = smov 0  }
   0x3 LB: > { %s1154_s28 = sadd.s32 4294967295, %s1086_s27   ;;  %s1157_s29 = sadd.s32 1, %s1086_s27   ;;  %s1086_s27 = sphi %s1141_s27, %s1409_s27   ;;  %s1082_s26 = sphi %s1139_s26, %s1408_s26   ;;  %s1078_s25 = sphi %s1137_s25, %s1407_s25   ;;  %s1074_s24 = sphi %s1135_s24, %s1406_s24  }
   0x4   : > { %s24_s30 = ssub.s32 %s1086_s27, %s1157_s29  ;;  %s27_s8 = sadd.s32 1, %s1082_s26 }
   0x5   : > { %p25_p0 = scmp.eq.s32.totalorder %s24_s30, 0  ;;  %p34_p1 = scmp.ne.s32.totalorder %s1082_s26, %s1078_s25 }
   0x6   : > { %p35_p2 = scmp.eq.s32.totalorder %s1086_s27, 0  ;;  %p40_p3 = scmp.ne.s32.totalorder %s1078_s25, %s1074_s24 }
   0x7   : > { %s1167_s9 = scalar_select %p25_p0, %s1082_s26, %s27_s8  }
   0x8   : > { %p36_p4 = por %p35_p2, %p34_p1  ;;  %p41_p5 = scmp.eq.s32.totalorder %s1154_s28, 0 }
   0x9   : > { %p975_p6 = scmp.lt.s32.totalorder %s1086_s27, 2  ;;  %s234_s11 = sand.u32 1, %s1082_s26  }
   0xa   : > { %p1171_p7 = por %p41_p5, %p40_p3  ;;  %s881_s12 = sshll.u32 %s234_s11, 6 }
   0xb   : > { %s900_s13 = sshll.u32 %s1086_s27, 10  ;;  %s238_s17 = scalar_lea.vmem [#allocation2], %s881_s12 }
   0xc   : > { %s1180_s16 = scalar_lea.hbm %s1395_s0, %s900_s13  ;;  %s245_s18 = sshll.u32 %s238_s17, 4  ;;  %s1182_s18 = int_to_ptr.vmem [resolvable:$true] %s245_s18 }
   0xd   : > { %p1184_p8 = pnand %p975_p6, %p36_p4  ;;  %s1189_s20 = scalar_lea.sflag [#allocation3], %s234_s11 }
   0xe   : > { %s1022_s21 = scalar_lea.hbm %s1180_s16, 1024  ;;  %s1027_s24 = scalar_lea.hbm %s1395_s0, 2048 }
   0xf   : > { %p1023_p10 = scmp.ne.s32.totalorder %s1180_s16, %s1022_s21  ;;  %p1024_p11 = pneg %p1184_p8 }
  0x10   : > { %p1028_p0 = scmp.lt.u32.totalorder %s1180_s16, %s1395_s0  ;;  %p1029_p1 = scmp.lt.u32.totalorder %s1027_s24, %s1022_s21 }
  0x11   : > { %p1025_p12 = pnand %p1024_p11, %p1023_p10  ;;  %p1031_p3 = scmp.lt.u32.totalorder %s1022_s21, %s1180_s16 }
  0x12   : > { %p1030_p2 = por %p1029_p1, %p1028_p0 }
  0x13   : > { %p1026_p13 = pneg %p1025_p12 }
  0x14   : > { %p1032_p4 = por %p1031_p3, %p1030_p2 }
  0x16   : > { %p1033_p5 = pnand %p1032_p4, %p1026_p13 }
  0x18   : > { %1036 = shalt.err (!%p1033_p5)
}
  0x19   : > { %s1037_s11 = scalar_lea.vmem %s1182_s18, 1024  ;;  %s1088_s12 = smov [#allocation2]  }
  0x1a   : > { %p1038_p6 = scmp.ne.s32.totalorder %s1182_s18, %s1037_s11  ;;  %s1042_s13 = sshll.u32 %s1088_s12, 4  ;;  %s1043_s13 = int_to_ptr.vmem [resolvable:$false] %s1042_s13 }
  0x1b   : > { %s1044_s14 = scalar_lea.vmem %s1043_s13, 2048  ;;  %p1045_p9 = scmp.lt.s32.totalorder %s1182_s18, %s1043_s13 }
  0x1c   : > { %p1040_p10 = pnand %p1038_p6, %p1024_p11  ;;  %p1046_p0 = scmp.lt.s32.totalorder %s1044_s14, %s1037_s11 }
  0x1e   : > { %p1041_p12 = pneg %p1040_p10  ;;  %p1047_p1 = por %p1046_p0, %p1045_p9 }
  0x20   : > { %p1048_p2 = pnand %p1047_p1, %p1041_p12 }
  0x22   : > { %1051 = shalt.err (!%p1048_p2)
}
  0x23   : > { %s1089_s15 = smov 256   ;;  %s1090_s17 = smov 16  }
  0x24   : > { %974 = dma.hbm_to_vmem [thread:$0]  (!%p1184_p8), %s1180_s16, 1024, %s1182_s18, %s1189_s20, %s1089_s15, %s1089_s15, %s1090_s17  }
  0x25   : > { %p253_p11 = scmp.lt.s32.totalorder %s1086_s27, 3  ;;  %p1405_p13 = scmp.ge.s32.totalorder %s1086_s27, 1 }
  0x27   : > { %p254_p3 = pnand %p1405_p13, %p253_p11 }
  0x28   : > { %s259_s21 = sand.u32 (!%p254_p3), 1, %s1078_s25  }
  0x29   : > { %257 = sbr.rel (%p254_p3) target bundleno = 1302 (0x516), region = 48  ;;  %s885_s22 = sshll.u32 (!%p254_p3), %s259_s21, 6 }
  0x2a   : > { %s260_s23 = scalar_lea.sflag (!%p254_p3), [#allocation3], %s259_s21  ;;  %s263_s24 = scalar_lea.vmem (!%p254_p3), [#allocation2], %s885_s22 }
  0x30   : > { %1069 = dma.done.wait (%p1171_p7), %s260_s23, 1024  }
  0x31   : > { %1071 = vsyncadd (%p1171_p7), %s260_s23, 4294966272  ;;  %v1225_v0 = vld [vmem:[%s263_s24 + $0x20] sm:$0xff]  ;;  %v1227_v1 = vld [vmem:[%s263_s24 + $0x28] sm:$0xff]  ;;  %v1091_v12 = vmov 0.0|0.0   ;;  %vm1092_vm0 = vmmov 0   ;;  %v1093_v13 = vmov 0.0  }
  0x32   : > { %v1229_v2 = vld [vmem:[%s263_s24] sm:$0xff]  ;;  %v313_v3 = vadd.f32 %v1227_v1, %v1225_v0  ;;  %v1233_v4 = vld [vmem:[%s263_s24 + $0x8] sm:$0xff]  ;;  %v1235_v5 = vld [vmem:[%s263_s24 + $0x30] sm:$0xff]  ;;  %953 = vmatprep.subr.bf16.mxu0 %v1091_v12  ;;  %928 = vmatprep.mubr.msk.f32.mxu0 %vm1092_vm0, %v1093_v13  ;;  %vm325_vm1 = vcmask 261120   ;;  %vm403_vm2 = vcmask 15360   ;;  %vm416_vm3 = vcmask 1041408  }
  0x33   : > { %v1237_v6 = vld [vmem:[%s263_s24 + $0x38] sm:$0xff]  ;;  %v307_v7 = vadd.f32 %v1233_v4, %v1229_v2  ;;  %v1241_v8 = vld [vmem:[%s263_s24 + $0x10] sm:$0xff]  ;;  %v323_v24 = vld [vmem:[%s1398_s3] sm:$0x3]  ;;  %vm507_vm4 = vcmask 1024   ;;  %v1094_v40 = vmov 0  }
  0x34   : > { %v1243_v9 = vld [vmem:[%s263_s24 + $0x18] sm:$0xff]  ;;  %314 = vadd.xlane.f32.xlu1 %v313_v3  ;;  %v316_v10 = vadd.f32 %v1237_v6, %v1235_v5  ;;  %v399_v25 = vld [vmem:[%s1396_s1] sm:$0xff]  ;;  %v400_v31 = vld [vmem:[%s1396_s1 + $0x8] sm:$0xff]  ;;  %1014 = vset.pattern.permute.xlu0 %v1094_v40  ;;  %p294_p7 = scmp.lt.s32.totalorder %s1154_s28, 1 }
  0x35   : > { %308 = vadd.xlane.f32.xlu0 %v307_v7  ;;  %v310_v11 = vadd.f32 %v1243_v9, %v1241_v8  ;;  %933 = vmatprep.mubr.msk.f32.mxu1 %vm403_vm2, %v399_v25  ;;  %v324_v26 = vld [vmem:[%s1399_s4] sm:$0x3]  ;;  %v401_v33 = vld [vmem:[%s1396_s1 + $0x10] sm:$0xff]  ;;  %v402_v35 = vld [vmem:[%s1396_s1 + $0x18] sm:$0xff] }
  0x36   : > { %v505_v28 = vld [vmem:[%s1397_s2] sm:$0x3]  ;;  %v583_v37 = vld [vmem:[%s1400_s5 + $0x8] sm:$0xff]  ;;  %v584_v38 = vld [vmem:[%s1400_s5 + $0x10] sm:$0xff]  ;;  %1015 = vset.pattern.permute.xlu1 %v1094_v40  ;;  %s1411_s28 = smov (!%p294_p7, %s1154_s28), 1 }
  0x37   : > { %v582_v36 = vld [vmem:[%s1400_s5] sm:$0xff]  ;;  %v585_v39 = vld [vmem:[%s1400_s5 + $0x18] sm:$0xff]  ;;  %v588_v40 = vld [vmem:[%s1401_s6 + $0x10] sm:$0xff]  ;;  %s901_s17 = sshll.u32 %s1411_s28, 8 }
  0x38   : > { %317 = vadd.xlane.f32.xlu1 %v316_v10  ;;  %s1316_s23 = scalar_lea.vmem %s1402_s7, %s901_s17 }
  0x39   : > { %311 = vadd.xlane.f32.xlu0 %v310_v11 }
  0xc1   : > { %v315_v14 = vpop.xlane.xlu1 %314 }
  0xc2   : > { %v309_v15 = vpop.xlane.xlu0 %308  ;;  %v321_v20 = vmul.f32 0.00390625, %v315_v14 }
  0xc3   : > { %v319_v18 = vmul.f32 0.00390625, %v309_v15 }
  0xc5   : > { %v318_v16 = vpop.xlane.xlu1 %317 }
  0xc6   : > { %v312_v17 = vpop.xlane.xlu0 %311  ;;  %v322_v21 = vmul.f32 0.00390625, %v318_v16 }
  0xc7   : > { %v320_v19 = vmul.f32 0.00390625, %v312_v17 }
  0xc8   : > { %v957_v23 = vpack.c.bf16 %v322_v21, %v321_v20 }
  0xc9   : > { %v954_v22 = vpack.c.bf16 %v320_v19, %v319_v18 }
  0xcb   : > { %955 = vmatpush3.bf16.msra.mxu0 %v954_v22 }
  0xcc   : > { %956 = vmatprep.subr.bf16.mxu0 %v1091_v12 }
  0xcf   : > { %958 = vmatpush3.bf16.msra.mxu0 %v957_v23 }
  0xd2   : > { %929 = vmatmul.mubr.msk.f32.vlgmr.msra.gmra.mrb[0].mxu0 %vm325_vm1, %v323_v24 }
 0x1a5   : > { %v395_v27 = vpop.f32.mrb[0].mxu0 }
 0x1a6   : > { %v396_v29 = vadd.f32 %v395_v27, %v324_v26  ;;  %v930_v30 = vpop.f32.mrb[1].mxu0  ;;  %v587_v27 = vld [vmem:[%s1401_s6 + $0x8] sm:$0xff] }
 0x1a8   : > { %931 = vmatprep.subr.msk.mxu1 %vm416_vm3, %v396_v29  ;;  %v506_v32 = vmul.f32 %v505_v28, %v396_v29 }
 0x1a9   : > { %932 = vmatpush3.msk.msra.mxu1 %vm416_vm3, %v396_v29  ;;  %v589_v29 = vld [vmem:[%s1401_s6 + $0x18] sm:$0xff] }
 0x1aa   : > { %934 = vmatmul.mubr.msk.f32.vlgmr.msra.gmra.mrb[0].mxu1 %vm403_vm2, %v400_v31  ;;  %960 = vmatprep.subr.bf16.mxu1 %v954_v22  ;;  %v508_v34 = vsel %vm507_vm4, %v506_v32, 0.0 }
 0x1ab   : > { %509 = vadd.xlane.f32.xlu0 %v508_v34  ;;  %962 = vmatpush3.bf16.msra.mxu1 %v954_v22 }
 0x1ac   : > { %964 = vmatprep.subr.bf16.mxu1 %v957_v23  ;;  %936 = vmatprep.mubr.msk.f32.mxu1 %vm403_vm2, %v401_v33 }
 0x1ae   : > { %937 = vmatmul.mubr.msk.f32.gmra.mrb[2].mxu1 %vm403_vm2, %v402_v35 }
 0x1af   : > { %966 = vmatpush3.bf16.msra.mxu1 %v957_v23  ;;  %947 = vmatprep.mubr.msk.f32.mxu1 %vm325_vm1, %v582_v36 }
 0x1b2   : > { %948 = vmatmul.mubr.msk.f32.vlgmr.msra.gmra.mrb[4].mxu1 %vm325_vm1, %v583_v37 }
 0x1b3   : > { %950 = vmatprep.mubr.msk.f32.mxu1 %vm325_vm1, %v584_v38 }
 0x1b6   : > { %951 = vmatmul.mubr.msk.f32.gmra.mrb[6].mxu1 %vm325_vm1, %v585_v39 }
 0x238   : > { %v510_v41 = vpop.xlane.xlu0 %509 }
 0x239   : > { %v511_v42 = vrot.slane %v510_v41, 4 }
 0x23b   : > { %v512_v43 = vadd.f32 %v511_v42, %v510_v41 }
 0x23d   : > { %v513_v44 = vrot.slane %v512_v43, 2 }
 0x23f   : > { %v514_v45 = vadd.f32 %v513_v44, %v512_v43 }
 0x241   : > { %v515_v46 = vrot.slane %v514_v45, 1 }
 0x243   : > { %v516_v47 = vadd.f32 %v515_v46, %v514_v45 }
 0x245   : > { %967 = vpush %v516_v47 }
 0x276   : > { %s968_s19 = spop %967 }
 0x277   : > { %v564_v23 = vstv %s968_s19 }
 0x27d   : > { %v935_v48 = vpop.f32.mrb[0].mxu1 }
 0x27e   : > { %525 = vperm.xlu0 %1014, %v935_v48   ;;  %v486_v49 = vpop.f32.mrb[1].mxu1 }
 0x27f   : > { %520 = vperm.xlu1 %1015, %v486_v49  }
 0x281   : > { %v938_v50 = vpop.f32.mrb[2].mxu1 }
 0x282   : > { %v496_v51 = vpop.f32.mrb[3].mxu1 }
 0x283   : > { %530 = vperm.xlu1 %1015, %v496_v51  }
 0x285   : > { %v949_v52 = vpop.f32.mrb[4].mxu1 }
 0x286   : > { %v668_v53 = vpop.f32.mrb[5].mxu1  ;;  %v674_v28 = vadd.f32 %v949_v52, %v587_v27 }
 0x287   : > { %535 = vperm.xlu1 %1015, %v938_v50  }
 0x289   : > { %v952_v54 = vpop.f32.mrb[6].mxu1 }
 0x28a   : > { %v684_v30 = vadd.f32 %v952_v54, %v589_v29  ;;  %v678_v31 = vpop.f32.mrb[7].mxu1 }
 0x28b   : > { %v679_v41 = vadd.f32 %v678_v31, %v588_v40 }
 0x2fd   : > { %v526_v55 = vpop.permute.xlu0 %525 }
 0x2fe   : > { %v521_v56 = vpop.permute.xlu1 %520  ;;  %v540_v57 = vmul.f32 %v526_v55, %v1241_v8  ;;  %v541_v58 = vmul.f32 %v526_v55, %v1243_v9 }
 0x2ff   : > { %v538_v59 = vmul.f32 %v521_v56, %v1229_v2  ;;  %v539_v60 = vmul.f32 %v521_v56, %v1233_v4 }
 0x301   : > { %v546_v3 = vadd.f32 %v540_v57, %v538_v59  ;;  %v555_v7 = vadd.f32 %v541_v58, %v539_v60 }
 0x302   : > { %v531_v61 = vpop.permute.xlu1 %530 }
 0x303   : > { %v542_v62 = vmul.f32 %v531_v61, %v1225_v0  ;;  %v543_v63 = vmul.f32 %v531_v61, %v1227_v1 }
 0x305   : > { %v547_v11 = vadd.f32 %v546_v3, %v542_v62  ;;  %v556_v12 = vadd.f32 %v555_v7, %v543_v63 }
 0x306   : > { %v536_v10 = vpop.permute.xlu1 %535 }
 0x307   : > { %v544_v13 = vmul.f32 %v536_v10, %v1235_v5  ;;  %v545_v8 = vmul.f32 %v536_v10, %v1237_v6  ;;  %v586_v6 = vld [vmem:[%s1401_s6] sm:$0xff] }
 0x308   : > { %v669_v26 = vadd.f32 %v668_v53, %v586_v6 }
 0x309   : > { %v548_v14 = vadd.f32 %v547_v11, %v544_v13  ;;  %v557_v9 = vadd.f32 %v556_v12, %v545_v8 }
 0x30b   : > { %v549_v15 = vrot.slane %v548_v14, 4  ;;  %v558_v2 = vrot.slane %v557_v9, 4 }
 0x30d   : > { %v550_v16 = vadd.f32 %v549_v15, %v548_v14  ;;  %v559_v4 = vadd.f32 %v558_v2, %v557_v9 }
 0x30f   : > { %v551_v17 = vrot.slane %v550_v16, 2  ;;  %v560_v18 = vrot.slane %v559_v4, 2 }
 0x311   : > { %v552_v0 = vadd.f32 %v551_v17, %v550_v16  ;;  %v561_v19 = vadd.f32 %v560_v18, %v559_v4 }
 0x313   : > { %v553_v1 = vrot.slane %v552_v0, 1  ;;  %v562_v20 = vrot.slane %v561_v19, 1 }
 0x315   : > { %v554_v21 = vadd.f32 %v553_v1, %v552_v0  ;;  %v563_v22 = vadd.f32 %v562_v20, %v561_v19 }
 0x317   : > { %v565_v24 = vadd.f32 %v564_v23, %v554_v21  ;;  %v566_v5 = vadd.f32 %v564_v23, %v563_v22 }
 0x319   : > { %v567_v25 = vmax.f32 %v565_v24, %v566_v5 }
 0x31b   : > { %568 = vmax.xlane.f32.xlu1 %v567_v25 }
 0x32c   : > { %689 = vperm.xlu1 %1015, %v669_v26  }
 0x330   : > { %694 = vperm.xlu1 %1015, %v674_v28  }
 0x334   : > { %704 = vperm.xlu1 %1015, %v684_v30  }
 0x3a8   : > { %v569_v32 = vpop.xlane.xlu1 %568 }
 0x3a9   : > { %v570_v33 = vsub.f32 %v565_v24, %v569_v32  ;;  %v571_v34 = vsub.f32 %v566_v5, %v569_v32 }
 0x3ab   : > { %v572_v35 = vmul.f32 1.442695, %v570_v33  ;;  %v574_v36 = vmul.f32 1.442695, %v571_v34 }
 0x3ac   : > { %v690_v44 = vpop.permute.xlu1 %689 }
 0x3ad   : > { %1016 = vpow2.f32 %v572_v35 }
 0x3ae   : > { %1018 = vpow2.f32 %v574_v36 }
 0x3b0   : > { %v695_v49 = vpop.permute.xlu1 %694 }
 0x3b4   : > { %v705_v55 = vpop.permute.xlu1 %704 }
 0x3b7   : > { %v1017_v37 = vpop.eup %1016 }
 0x3b8   : > { %v1019_v38 = vpop.eup %1018 }
 0x3b9   : > { %v576_v39 = vadd.f32 %v1019_v38, %v1017_v37 }
 0x3bb   : > { %577 = vadd.xlane.f32.xlu0 %v576_v39 }
 0x3d1   : > { %699 = vperm.xlu0 %1014, %v679_v41  }
 0x448   : > { %v578_v42 = vpop.xlane.xlu0 %577 }
 0x449   : > { %1020 = vrcp.f32 %v578_v42 }
 0x450   : > { %v700_v52 = vpop.permute.xlu0 %699 }
 0x453   : > { %v1021_v43 = vpop.eup %1020 }
 0x454   : > { %v580_v45 = vmul.f32 %v1021_v43, %v1017_v37  ;;  %v581_v46 = vmul.f32 %v1021_v43, %v1019_v38 }
 0x456   : > { %v708_v47 = vmul.f32 %v690_v44, %v581_v46  ;;  %v707_v48 = vmul.f32 %v690_v44, %v580_v45  ;;  %v710_v50 = vmul.f32 %v695_v49, %v581_v46  ;;  %v709_v51 = vmul.f32 %v695_v49, %v580_v45 }
 0x457   : > { %v711_v53 = vmul.f32 %v700_v52, %v580_v45  ;;  %v712_v54 = vmul.f32 %v700_v52, %v581_v46  ;;  %v714_v56 = vmul.f32 %v705_v55, %v581_v46  ;;  %v713_v57 = vmul.f32 %v705_v55, %v580_v45 }
 0x458   : > { %747 = vxpose.xlu0.b32.start [1/4] (short) %v708_v47, 128  ;;  %715 = vxpose.xlu1.b32.start [1/4] (short) %v707_v48, 128 }
 0x45c   : > { %748 = vxpose.xlu0.b32.cont [2/4] (short) %v710_v50, 128  ;;  %716 = vxpose.xlu1.b32.cont [2/4] (short) %v709_v51, 128 }
 0x460   : > { %749 = vxpose.xlu0.b32.cont [3/4] (short) %v712_v54, 128  ;;  %717 = vxpose.xlu1.b32.cont [3/4] (short) %v711_v53, 128 }
 0x464   : > { %750 = vxpose.xlu0.b32.end [4/4] (short) %v714_v56, 128  ;;  %718 = vxpose.xlu1.b32.end [4/4] (short) %v713_v57, 128 }
 0x4d8   : > { %v763_v58 = vpop.trf.xlu0  ;;  %v731_v59 = vpop.trf.xlu1 }
 0x4d9   : > { %795 = vst.msk [vmem:[%s1316_s23 + $0x80] sm:$0xff] %vm325_vm1, %v763_v58  ;;  %779 = vst.msk [vmem:[%s1316_s23] sm:$0xff] %vm325_vm1, %v731_v59 }
 0x4dc   : > { %v764_v60 = vpop.trf.xlu0  ;;  %v732_v61 = vpop.trf.xlu1 }
 0x4dd   : > { %796 = vst.msk [vmem:[%s1316_s23 + $0x88] sm:$0xff] %vm325_vm1, %v764_v60  ;;  %780 = vst.msk [vmem:[%s1316_s23 + $0x8] sm:$0xff] %vm325_vm1, %v732_v61 }
 0x4e0   : > { %v765_v62 = vpop.trf.xlu0  ;;  %v733_v63 = vpop.trf.xlu1 }
 0x4e1   : > { %797 = vst.msk [vmem:[%s1316_s23 + $0x90] sm:$0xff] %vm325_vm1, %v765_v62  ;;  %781 = vst.msk [vmem:[%s1316_s23 + $0x10] sm:$0xff] %vm325_vm1, %v733_v63 }
 0x4e4   : > { %v766_v3 = vpop.trf.xlu0  ;;  %v734_v7 = vpop.trf.xlu1 }
 0x4e5   : > { %798 = vst.msk [vmem:[%s1316_s23 + $0x98] sm:$0xff] %vm325_vm1, %v766_v3  ;;  %782 = vst.msk [vmem:[%s1316_s23 + $0x18] sm:$0xff] %vm325_vm1, %v734_v7 }
 0x4e8   : > { %v767_v10 = vpop.trf.xlu0  ;;  %v735_v11 = vpop.trf.xlu1 }
 0x4e9   : > { %799 = vst.msk [vmem:[%s1316_s23 + $0xa0] sm:$0xff] %vm325_vm1, %v767_v10  ;;  %783 = vst.msk [vmem:[%s1316_s23 + $0x20] sm:$0xff] %vm325_vm1, %v735_v11 }
 0x4ec   : > { %v768_v12 = vpop.trf.xlu0  ;;  %v736_v13 = vpop.trf.xlu1 }
 0x4ed   : > { %800 = vst.msk [vmem:[%s1316_s23 + $0xa8] sm:$0xff] %vm325_vm1, %v768_v12  ;;  %784 = vst.msk [vmem:[%s1316_s23 + $0x28] sm:$0xff] %vm325_vm1, %v736_v13 }
 0x4f0   : > { %v769_v8 = vpop.trf.xlu0  ;;  %v737_v14 = vpop.trf.xlu1 }
 0x4f1   : > { %801 = vst.msk [vmem:[%s1316_s23 + $0xb0] sm:$0xff] %vm325_vm1, %v769_v8  ;;  %785 = vst.msk [vmem:[%s1316_s23 + $0x30] sm:$0xff] %vm325_vm1, %v737_v14 }
 0x4f4   : > { %v770_v9 = vpop.trf.xlu0  ;;  %v738_v15 = vpop.trf.xlu1 }
 0x4f5   : > { %802 = vst.msk [vmem:[%s1316_s23 + $0xb8] sm:$0xff] %vm325_vm1, %v770_v9  ;;  %786 = vst.msk [vmem:[%s1316_s23 + $0x38] sm:$0xff] %vm325_vm1, %v738_v15 }
 0x4f8   : > { %v771_v2 = vpop.trf.xlu0  ;;  %v739_v16 = vpop.trf.xlu1 }
 0x4f9   : > { %803 = vst.msk [vmem:[%s1316_s23 + $0xc0] sm:$0xff] %vm325_vm1, %v771_v2  ;;  %787 = vst.msk [vmem:[%s1316_s23 + $0x40] sm:$0xff] %vm325_vm1, %v739_v16 }
 0x4fc   : > { %v772_v4 = vpop.trf.xlu0  ;;  %v740_v17 = vpop.trf.xlu1 }
 0x4fd   : > { %804 = vst.msk [vmem:[%s1316_s23 + $0xc8] sm:$0xff] %vm325_vm1, %v772_v4  ;;  %788 = vst.msk [vmem:[%s1316_s23 + $0x48] sm:$0xff] %vm325_vm1, %v740_v17 }
 0x500   : > { %v773_v18 = vpop.trf.xlu0  ;;  %v741_v0 = vpop.trf.xlu1 }
 0x501   : > { %805 = vst.msk [vmem:[%s1316_s23 + $0xd0] sm:$0xff] %vm325_vm1, %v773_v18  ;;  %789 = vst.msk [vmem:[%s1316_s23 + $0x50] sm:$0xff] %vm325_vm1, %v741_v0 }
 0x504   : > { %v774_v19 = vpop.trf.xlu0  ;;  %v742_v1 = vpop.trf.xlu1 }
 0x505   : > { %806 = vst.msk [vmem:[%s1316_s23 + $0xd8] sm:$0xff] %vm325_vm1, %v774_v19  ;;  %790 = vst.msk [vmem:[%s1316_s23 + $0x58] sm:$0xff] %vm325_vm1, %v742_v1 }
 0x508   : > { %v775_v20 = vpop.trf.xlu0  ;;  %v743_v21 = vpop.trf.xlu1 }
 0x509   : > { %807 = vst.msk [vmem:[%s1316_s23 + $0xe0] sm:$0xff] %vm325_vm1, %v775_v20  ;;  %791 = vst.msk [vmem:[%s1316_s23 + $0x60] sm:$0xff] %vm325_vm1, %v743_v21 }
 0x50c   : > { %v776_v22 = vpop.trf.xlu0  ;;  %v744_v23 = vpop.trf.xlu1 }
 0x50d   : > { %808 = vst.msk [vmem:[%s1316_s23 + $0xe8] sm:$0xff] %vm325_vm1, %v776_v22  ;;  %792 = vst.msk [vmem:[%s1316_s23 + $0x68] sm:$0xff] %vm325_vm1, %v744_v23 }
 0x510   : > { %v777_v24 = vpop.trf.xlu0  ;;  %v745_v5 = vpop.trf.xlu1 }
 0x511   : > { %809 = vst.msk [vmem:[%s1316_s23 + $0xf0] sm:$0xff] %vm325_vm1, %v777_v24  ;;  %793 = vst.msk [vmem:[%s1316_s23 + $0x70] sm:$0xff] %vm325_vm1, %v745_v5 }
 0x514   : > { %v778_v25 = vpop.trf.xlu0  ;;  %v746_v6 = vpop.trf.xlu1 }
 0x515   : > { %810 = vst.msk [vmem:[%s1316_s23 + $0xf8] sm:$0xff] %vm325_vm1, %v778_v25  ;;  %794 = vst.msk [vmem:[%s1316_s23 + $0x78] sm:$0xff] %vm325_vm1, %v746_v6 }
 0x516 PF: > { %p17_p8 = scmp.ge.s32.totalorder %s1157_s29, 4   ;;  %s1406_s24 = smov %s1078_s25 }
 0x517   : > { %s1407_s25 = smov %s1082_s26  ;;  %s1408_s26 = smov %s1167_s9 }
 0x518   : > { %s1409_s27 = smov %s1157_s29  ;;  %19 = sbr.rel (!%p17_p8) target bundleno = 3 (0x3), region = 88 }
 0x51f   :  { %832 = vsyncpa [#allocation3], 1 }
 0x520   :  { %834 = vsyncpa [#allocation3 + $0x1], 1 }

</bundles_post_ra>
